<compile_context>
chip_gen: v7x
topology: tpu7x:2x2x1
jax: 0.10.0
libtpu: 0.0.40
codegen_flags: <defaults>
</compile_context>

<pallas_src>
import functools

import jax
import jax.numpy as jnp
from jax.experimental import pallas as pl
from jax.experimental.pallas import tpu as pltpu

_LANE = 128
_SUBLANE = 8

# Single-pass fast path threshold: working set ~= in + out + f32 temps
# (~16 B/elem for f32 input) -> 1.5M elems keeps it ~24 MiB, comfortably under
# the scoped-VMEM limit on v5e/v6e and v7x (64 MiB physical).
_SINGLE_PASS_MAX_ELEMS = 1_572_864  # 1.5 * 2**20

# Two-pass (large-tensor) path block sizes.
_SSQ_BLOCK_ROWS = 16384    # pass 1: (16384,128) f32 = 8 MiB block (input only)
_SCALE_BLOCK_ROWS = 8192   # pass 2: 4 MiB in + 4 MiB out per buffer
_VMEM_LIMIT_BYTES = 32 * 1024 * 1024


def _fused_kernel(x_ref, o_ref):
    """Single pass: reduce + scale with the whole tensor resident in VMEM."""
    x = x_ref[...].astype(jnp.float32)
    inv_norm = 1.0 / jnp.sqrt(jnp.sum(x * x))
    o_ref[...] = (x * inv_norm).astype(o_ref.dtype)


def _ssq_partial_kernel(x_ref, psum_ref, *, total_rows, block_rows, ragged):
    """Pass 1: per-block partial sums of squares -> one (8,128) slab per block.

    Every grid step writes its own output block, so the grid axis is
    megacore-parallel; the cross-block reduction finishes in plain JAX.
    """

    def rowsum8(xsq):
        # (block_rows, 128) -> (8, 128): sum groups of 8 consecutive sublanes.
        # The reshape matches the native (8,128) tiling, so it is layout-free.
        return xsq.reshape(block_rows // _SUBLANE, _SUBLANE, _LANE).sum(axis=0)

    if ragged:
        i = pl.program_id(0)
        last = pl.num_programs(0) - 1

        @pl.when(i != last)
        def _():
            x = x_ref[...].astype(jnp.float32)
            psum_ref[0] = rowsum8(x * x)

        @pl.when(i == last)
        def _():
            # Ragged final block: rows past total_rows hold unspecified data.
            # Mask them to zero BEFORE squaring (guards against NaN/Inf junk).
            x = x_ref[...].astype(jnp.float32)
            rid = i * block_rows + jax.lax.broadcasted_iota(jnp.int32, x.shape, 0)
            x = jnp.where(rid < total_rows, x, 0.0)
            psum_ref[0] = rowsum8(x * x)
    else:
        x = x_ref[...].astype(jnp.float32)
        psum_ref[0] = rowsum8(x * x)


def _scale_kernel(inv_ref, x_ref, o_ref):
    """Pass 2: o = x * inv_norm.  inv_norm is a scalar living in SMEM."""
    inv_norm = inv_ref[0]
    o_ref[...] = (x_ref[...].astype(jnp.float32) * inv_norm).astype(o_ref.dtype)


def ofn(
    x: jax.Array,
    *,
    single_pass_max_elems: int = _SINGLE_PASS_MAX_ELEMS,
    ssq_block_rows: int = _SSQ_BLOCK_ROWS,
    scale_block_rows: int = _SCALE_BLOCK_ROWS,
) -> jax.Array:
    """x / ||x||_2 over the whole tensor, via Pallas TPU kernels."""
    orig_shape = x.shape
    orig_dtype = x.dtype
    total = x.size

    flat = x.reshape(-1)
    pad = (-total) % _LANE

    # ---------------- Fast path: single fused pass, whole tensor in VMEM.
    if total <= max(single_pass_max_elems, _SUBLANE * _LANE):
        if pad:
            # Cheap for small tensors; zeros do not change the sum of squares.
            flat = jnp.pad(flat, (0, pad))
        rows = flat.size // _LANE
        x2d = flat.reshape(rows, _LANE)
        out2d = pl.pallas_call(
            _fused_kernel,
            out_shape=jax.ShapeDtypeStruct((rows, _LANE), orig_dtype),
            compiler_params=pltpu.CompilerParams(
                vmem_limit_bytes=_VMEM_LIMIT_BYTES,
            ),
        )(x2d)
        out = out2d.reshape(-1)
        if pad:
            out = out[:total]
        return out.reshape(orig_shape)

    # ---------------- Large-tensor path: 2 reads + 1 write of HBM (minimum
    # possible, since the scale needs the full norm first).
    if pad:
        # Rare fallback (large tensor whose element count is not a multiple of
        # 128); costs one extra padded copy of x.
        flat = jnp.pad(flat, (0, pad))
    rows = flat.size // _LANE
    x2d = flat.reshape(rows, _LANE)

    # Pass 1: per-block partial sums of squares (megacore-parallel).
    ssq_rows = max(_SUBLANE, (min(ssq_block_rows, rows) // _SUBLANE) * _SUBLANE)
    n_blocks = pl.cdiv(rows, ssq_rows)
    ragged = (rows % ssq_rows) != 0
    psum = pl.pallas_call(
        functools.partial(
            _ssq_partial_kernel,
            total_rows=rows,
            block_rows=ssq_rows,
            ragged=ragged,
        ),
        out_shape=jax.ShapeDtypeStruct((n_blocks, _SUBLANE, _LANE), jnp.float32),
        grid=(n_blocks,),
        in_specs=[pl.BlockSpec((ssq_rows, _LANE), lambda i: (i, 0))],
        out_specs=pl.BlockSpec((1, _SUBLANE, _LANE), lambda i: (i, 0, 0)),
        compiler_params=pltpu.CompilerParams(
            dimension_semantics=("parallel",),
            vmem_limit_bytes=_VMEM_LIMIT_BYTES,
        ),
    )(x2d)

    # Finish the reduction (tree-style, better numerics) + rsqrt in plain JAX.
    inv_norm = (1.0 / jnp.sqrt(jnp.sum(psum))).astype(jnp.float32).reshape(1)

    # Pass 2: elementwise scale; scalar comes from SMEM -> pure broadcast-mul.
    sc_rows = max(_SUBLANE, (min(scale_block_rows, rows) // _SUBLANE) * _SUBLANE)
    x_spec = pl.BlockSpec((sc_rows, _LANE), lambda i: (i, 0))
    out2d = pl.pallas_call(
        _scale_kernel,
        out_shape=jax.ShapeDtypeStruct((rows, _LANE), orig_dtype),
        grid=(pl.cdiv(rows, sc_rows),),
        in_specs=[
            pl.BlockSpec(memory_space=pltpu.MemorySpace.SMEM),
            x_spec,
        ],
        out_specs=x_spec,
        compiler_params=pltpu.CompilerParams(
            dimension_semantics=("parallel",),
            vmem_limit_bytes=_VMEM_LIMIT_BYTES,
        ),
    )(inv_norm, x2d)

    out = out2d.reshape(-1)
    if pad:
        out = out[:total]
    return out.reshape(orig_shape)


if __name__ == "__main__":
    key = jax.random.PRNGKey(0)

    # Primary example: small NCHW-like input (takes the single-pass fast path).
    x = jax.random.normal(key, (2, 4, 16, 16), dtype=jnp.float32)
    y = ofn(x)
    jax.block_until_ready(y)
    y_ref = x / jnp.sqrt(jnp.sum(jnp.square(x)))
    assert jnp.allclose(y, y_ref, rtol=1e-5, atol=1e-6), "single-pass mismatch"

    # Secondary check: force the two-pass (large-tensor) path, including the
    # ragged-final-block masking, on a still-small input.
    x2 = jax.random.normal(jax.random.PRNGKey(0), (2, 4, 100, 128),
                           dtype=jnp.float32)
    y2 = ofn(x2, single_pass_max_elems=0, ssq_block_rows=256,
             scale_block_rows=256)
    jax.block_until_ready(y2)
    y2_ref = x2 / jnp.sqrt(jnp.sum(jnp.square(x2)))
    assert jnp.allclose(y2, y2_ref, rtol=1e-5, atol=1e-6), "two-pass mismatch"

    print("KERNEL_OK")
</pallas_src>

<mosaic_0001>
module attributes {stable_mosaic.version = 11 : i64} {
  func.func @_fused_kernel(%arg0: memref<16x128xf32, #tpu.memory_space<vmem>>, %arg1: memref<16x128xf32, #tpu.memory_space<vmem>>) attributes {dimension_semantics = [], scalar_prefetch = 0 : i64, scratch_operands = 0 : i64, tpu.core_type = #tpu.core_type<tc>} {
    %c0 = arith.constant 0 : index
    %c0_0 = arith.constant 0 : index
    %0 = vector.load %arg0[%c0, %c0_0] : memref<16x128xf32, #tpu.memory_space<vmem>>, vector<16x128xf32>
    %1 = arith.mulf %0, %0 : vector<16x128xf32>
    %2 = vector.shape_cast %1 : vector<16x128xf32> to vector<1x16x128xf32>
    %cst = arith.constant dense<0.000000e+00> : vector<1xf32>
    %3 = vector.multi_reduction <add>, %2, %cst [1, 2] : vector<1x16x128xf32> to vector<1xf32>
    %4 = vector.shape_cast %3 : vector<1xf32> to vector<1x1x1xf32>
    %5 = vector.extract %4[0, 0, 0] : f32 from vector<1x1x1xf32>
    %6 = math.sqrt %5 : f32
    %cst_1 = arith.constant 1.000000e+00 : f32
    %7 = arith.divf %cst_1, %6 : f32
    %8 = vector.broadcast %7 : f32 to vector<16x128xf32>
    %9 = arith.mulf %0, %8 : vector<16x128xf32>
    %c0_2 = arith.constant 0 : index
    %c0_3 = arith.constant 0 : index
    %10 = vector.load %arg1[%c0_2, %c0_3] : memref<16x128xf32, #tpu.memory_space<vmem>>, vector<16x128xf32>
    tpu.vector_store %arg1[%c0_2, %c0_3], %9 {strides = array<i32>} : memref<16x128xf32, #tpu.memory_space<vmem>>, vector<16x128xf32>,
    return
  }
}

</mosaic_0001>

<bundles_post_ra>
// kernel: tpu_custom_call.1
= control target key start
LH: loop header
LB: loop body
LE: loop exit
PB: predicated region body
PF: predicated region fallthrough
CT: control target
= control target key end

     0   :  { %6 = vsyncpa [#allocation3], 0  ;;  %s177_s0 = inlined_call_operand.hbm [shape: f32[16,128], index: 0, kind: input, shape index: {}]   ;;  %s178_s1 = inlined_call_operand.hbm [shape: f32[16,128], index: 1, kind: output, shape index: {}]  }
   0x1   :  { %7 = vsyncpa [#allocation4], 0  ;;  %s133_s6 = smov [#allocation2]   ;;  %s85_s10 = scalar_lea.hbm %s177_s0, 256 }
   0x2   :  { %s13_s7 = sshll.u32 %s133_s6, 4  ;;  %p86_p0 = scmp.ne.s32.totalorder %s177_s0, %s85_s10  ;;  %s14_s7 = int_to_ptr.vmem [resolvable:$true] %s13_s7 }
   0x3   :  { %p89_p1 = scmp.lt.u32.totalorder %s85_s10, %s177_s0 }
   0x5   :  { %p91_p2 = pnand %p89_p1, %p86_p0 }
   0x7   :  { %94 = shalt.err (!%p91_p2)
}
   0x8   :  { %s95_s15 = scalar_lea.vmem %s14_s7, 256  ;;  %p100_p4 = scmp.lt.s32.totalorder %s14_s7, %s14_s7 }
   0x9   :  { %p96_p3 = scmp.ne.s32.totalorder %s14_s7, %s95_s15  ;;  %p101_p5 = scmp.lt.s32.totalorder %s95_s15, %s95_s15 }
   0xb   :  { %p102_p6 = por %p101_p5, %p100_p4 }
   0xd   :  { %p103_p7 = pnand %p102_p6, %p96_p3 }
   0xf   :  { %106 = shalt.err (!%p103_p7)
}
  0x10   :  { %s134_s16 = smov 128   ;;  %s135_s17 = smov 8  }
  0x11   :  { %19 = dma.hbm_to_vmem [thread:$0]  %s177_s0, 256, %s14_s7, [#allocation3], %s134_s16, %s134_s16, %s135_s17  }
  0x12   :  { %129 = dma.done.wait [#allocation3], 256  }
  0x13   :  { %130 = vsyncadd [#allocation3], 4294967040  ;;  %v23_v0 = vld [vmem:[#allocation2] sm:$0xff]  ;;  %v24_v1 = vld [vmem:[#allocation2 + $0x8] sm:$0xff]  ;;  %s136_s21 = smov [#allocation5]  }
  0x14   :  { %v25_v2 = vmul.f32 %v23_v0, %v23_v0  ;;  %v26_v3 = vmul.f32 %v24_v1, %v24_v1  ;;  %s59_s22 = sshll.u32 %s136_s21, 4  ;;  %s60_s22 = int_to_ptr.vmem [resolvable:$true] %s59_s22 }
  0x15   :  { %s107_s24 = scalar_lea.vmem %s60_s22, 256  ;;  %p112_p9 = scmp.lt.s32.totalorder %s60_s22, %s60_s22 }
  0x16   :  { %v27_v4 = vadd.f32 %v26_v3, %v25_v2  ;;  %p108_p8 = scmp.ne.s32.totalorder %s60_s22, %s107_s24  ;;  %p113_p10 = scmp.lt.s32.totalorder %s107_s24, %s107_s24 }
  0x18   :  { %28 = vadd.xlane.f32.xlu0 %v27_v4  ;;  %p114_p11 = por %p113_p10, %p112_p9 }
  0x1a   :  { %p115_p12 = pnand %p114_p11, %p108_p8 }
  0xa5   :  { %v29_v5 = vpop.xlane.xlu0 %28 }
  0xa6   :  { %v30_v6 = vrot.slane %v29_v5, 4 }
  0xa8   :  { %v31_v7 = vadd.f32 %v30_v6, %v29_v5 }
  0xaa   :  { %v32_v8 = vrot.slane %v31_v7, 2 }
  0xac   :  { %v33_v9 = vadd.f32 %v32_v8, %v31_v7 }
  0xae   :  { %v34_v10 = vrot.slane %v33_v9, 1 }
  0xb0   :  { %v35_v11 = vadd.f32 %v34_v10, %v33_v9 }
  0xb2   :  { %71 = vpush %v35_v11 }
  0xe3   :  { %s72_s20 = spop %71 }
  0xe4   :  { %v37_v12 = vstv %s72_s20 }
  0xe5   :  { %81 = vrsqrt.f32 %v37_v12  ;;  %vm40_vm0 = vcmp.eq.f32.partialorder %v37_v12, inf  ;;  %v43_v15 = vand.u32 2147483648, %v37_v12  ;;  %vm42_vm1 = vcmp.eq.f32.partialorder %v37_v12, 0.0 }
  0xef   :  { %v82_v13 = vpop.eup %81 }
  0xf0   :  { %v39_v14 = vmul.f32 %v82_v13, %v37_v12 }
  0xf2   :  { %v41_v16 = vsel %vm40_vm0, %v37_v12, %v39_v14 }
  0xf3   :  { %v44_v17 = vsel %vm42_vm1, %v43_v15, %v41_v16 }
  0xf4   :  { %73 = vpush %v44_v17 }
 0x125   :  { %s74_s0 = spop %73 }
 0x126   :  { %v46_v18 = vstv %s74_s0 }
 0x127   :  { %83 = vrcp.f32 %v46_v18 }
 0x131   :  { %v84_v19 = vpop.eup %83 }
 0x132   :  { %75 = vpush %v84_v19 }
 0x163   :  { %s76_s23 = spop %75 }
 0x164   :  { %v49_v20 = vstv %s76_s23 }
 0x165   :  { %v50_v21 = vmul.f32 %v49_v20, %v23_v0  ;;  %v51_v22 = vmul.f32 %v49_v20, %v24_v1 }
 0x167   :  { %52 = vst [vmem:[#allocation5] sm:$0xff] %v50_v21  ;;  %53 = vst [vmem:[#allocation5 + $0x8] sm:$0xff] %v51_v22 }
 0x168   :  { %118 = shalt.err (!%p115_p12)
}
 0x169   :  { %s119_s27 = scalar_lea.hbm %s178_s1, 256 }
 0x16a   :  { %p120_p13 = scmp.ne.s32.totalorder %s178_s1, %s119_s27  ;;  %p123_p0 = scmp.lt.u32.totalorder %s119_s27, %s178_s1 }
 0x16c   :  { %p125_p1 = pnand %p123_p0, %p120_p13 }
 0x16e   :  { %128 = shalt.err (!%p125_p1)
}
 0x16f   :  { %65 = dma.vmem_to_hbm [thread:$0]  %s60_s22, 256, %s178_s1, [#allocation4], %s134_s16, %s134_s16, %s135_s17  }
 0x170   :  { %131 = dma.done.wait [#allocation4], 256  }
 0x171   :  { %132 = vsyncadd [#allocation4], 4294967040 }
 0x172   :  { %69 = vsyncpa [#allocation3], 1 }
 0x173   :  { %70 = vsyncpa [#allocation4], 1 }

</bundles_post_ra>
